<compile_context>
chip_gen: v6e
topology: v6e:2x2x1
jax: 0.10.0
libtpu: 0.0.40
codegen_flags: <defaults>
</compile_context>

<pallas_src>
import functools

import jax
import jax.numpy as jnp
from jax.experimental import pallas as pl
from jax.experimental.pallas import tpu as pltpu


# ----------------------------------------------------------------------------
# Kernel.
#   x_ref: (s, s, gt, H, W)        (batch dim squeezed)
#   o_ref: (gt, H, s*s*W)          (batch dim squeezed; row-interleave is baked
#                                   into this flat view, un-flattened for free
#                                   by the wrapper reshape)
# ----------------------------------------------------------------------------
def _expand_kernel(x_ref, o_ref):
    s, _s2, gt, H, W = x_ref.shape
    sW = s * W

    if x_ref.dtype == jnp.bfloat16:
        cdt, prec = jnp.bfloat16, jax.lax.Precision.DEFAULT   # 1 MXU pass, exact
    else:
        cdt, prec = jnp.float32, jax.lax.Precision.HIGHEST    # bit-exact for f32/f16

    # Column-scatter matrices P[i2]: (W, sW), P[i2][w, s*w + i2] = 1.
    # Built ONCE per grid step, hoisted out of the channel loop.
    def _col_scatter(i2):
        r = jax.lax.broadcasted_iota(jnp.int32, (W, sW), 0)
        c = jax.lax.broadcasted_iota(jnp.int32, (W, sW), 1)
        return (c == s * r + i2).astype(cdt)

    P = [_col_scatter(i2) for i2 in range(s)]

    def body(j, carry):
        for i1 in range(s):
            inner = None
            for i2 in range(s):
                a = x_ref[i1, i2, j].astype(cdt)                     # (H, W)
                t = jnp.dot(a, P[i2], precision=prec,
                            preferred_element_type=jnp.float32)      # (H, sW)
                inner = t if inner is None else inner + t
            # Dense lane-contiguous store; no row-scatter matmul, no accumulator.
            o_ref[j, :, i1 * sW:(i1 + 1) * sW] = inner.astype(o_ref.dtype)
        return carry

    # fori_loop bounds live ranges per channel (prevents vreg spills).
    jax.lax.fori_loop(0, gt, body, 0)


# ----------------------------------------------------------------------------
# Channel-tile selection from the real padded, double-buffered working set.
# ----------------------------------------------------------------------------
def _round_up(n, m):
    return ((n + m - 1) // m) * m


def _pick_channel_tile(cg, s, H, W, itemsize, *, budget_bytes, min_groups):
    # Padded VMEM bytes per channel (last two dims pad to (8, 128)), for both
    # the input block and the output block, x2 for BlockSpec double buffering.
    in_per_c = s * s * _round_up(H, 8) * _round_up(W, 128) * itemsize
    out_per_c = _round_up(H, 8) * _round_up(s * s * W, 128) * itemsize
    per_c = 2 * (in_per_c + out_per_c)

    best = 1
    for d in range(1, cg + 1):
        if cg % d:
            continue
        if cg // d < min_groups:
            continue
        if d * per_c <= budget_bytes:
            best = d
    return best


# ----------------------------------------------------------------------------
# Wrapper: NCHW in, NCHW out.  Only metadata-only reshapes outside the kernel.
# ----------------------------------------------------------------------------
@functools.partial(jax.jit, static_argnames=("gain",))
def expand_forward(x, gain=2):
    B, C, H, W = x.shape
    s = int(gain)
    assert C % (s * s) == 0, "Expand requires C divisible by gain**2"
    cg = C // (s * s)

    # Free (metadata-only) view: channel axis -> (i1, i2, j).
    x6 = x.reshape(B, s, s, cg, H, W)

    # Guarantee >=2 parallel grid steps when possible (v7x has 2 TensorCores).
    min_groups = 1 if B >= 2 else min(2, cg)
    gt = _pick_channel_tile(cg, s, H, W, x.dtype.itemsize,
                            budget_bytes=12 << 20, min_groups=min_groups)
    grid = (B, cg // gt)

    flops = 2 * B * cg * s * s * H * W * (s * W)            # P matmuls only
    bytes_accessed = 2 * x.size * x.dtype.itemsize          # one read + one write

    y4 = pl.pallas_call(
        _expand_kernel,
        out_shape=jax.ShapeDtypeStruct((B, cg, H, s * s * W), x.dtype),
        grid_spec=pltpu.PrefetchScalarGridSpec(
            num_scalar_prefetch=0,
            grid=grid,
            in_specs=[
                pl.BlockSpec((None, s, s, gt, H, W),
                             lambda b, g: (b, 0, 0, g, 0, 0)),
            ],
            out_specs=pl.BlockSpec((None, gt, H, s * s * W),
                                   lambda b, g: (b, g, 0, 0)),
        ),
        compiler_params=pltpu.CompilerParams(
            dimension_semantics=("parallel", "parallel"),
            vmem_limit_bytes=32 * 1024 * 1024),
        cost_estimate=pl.CostEstimate(flops=flops, transcendentals=0,
                                      bytes_accessed=bytes_accessed),
    )(x6)

    # Free reshape: (B, cg, H, s*s*W) row-major == (B, cg, s*H, s*W).
    return y4.reshape(B, cg, s * H, s * W)


# ----------------------------------------------------------------------------
# Pure-JAX reference (mirrors the torch view/permute/view exactly).
# ----------------------------------------------------------------------------
def expand_reference(x, gain=2):
    b, c, h, w = x.shape
    s = gain
    y = x.reshape(b, s, s, c // (s * s), h, w)
    y = jnp.transpose(y, (0, 3, 4, 1, 5, 2))
    return y.reshape(b, c // (s * s), h * s, w * s)


if __name__ == "__main__":
    key = jax.random.PRNGKey(0)
    B, C, H, W = 2, 16, 16, 16      # C must be divisible by gain**2 = 4
    x = jax.random.normal(key, (B, C, H, W), jnp.float32)

    out = expand_forward(x, gain=2)
    jax.block_until_ready(out)

    ref = expand_reference(x, gain=2)
    assert out.shape == (B, C // 4, 2 * H, 2 * W), out.shape
    assert jnp.allclose(out, ref, atol=1e-5, rtol=1e-5), (
        float(jnp.max(jnp.abs(out - ref))))

    print("KERNEL_OK")
</pallas_src>

<mosaic_0001>
module attributes {stable_mosaic.version = 11 : i64} {
  func.func @_expand_kernel(%arg0: i32, %arg1: i32, %arg2: memref<1x2x2x4x16x16xf32, #tpu.memory_space<vmem>>, %arg3: memref<1x4x16x64xf32, #tpu.memory_space<vmem>>) attributes {dimension_semantics = [#tpu.dimension_semantics<parallel>, #tpu.dimension_semantics<parallel>], iteration_bounds = array<i64: 2, 1>, scalar_prefetch = 0 : i64, scratch_operands = 0 : i64, tpu.core_type = #tpu.core_type<tc>, window_params = [{transform_indices = @transform_0, window_bounds = array<i64: 1, 2, 2, 4, 16, 16>}, {transform_indices = @transform_1, window_bounds = array<i64: 1, 4, 16, 64>}]} {
    %0 = tpu.iota {dimensions = array<i32: 0>} : vector<16x32xi32>
    %1 = tpu.iota {dimensions = array<i32: 1>} : vector<16x32xi32>
    %c2_i32 = arith.constant 2 : i32
    %2 = vector.broadcast %c2_i32 : i32 to vector<16x32xi32>
    %3 = arith.muli %2, %0 : vector<16x32xi32>
    %c0_i32 = arith.constant 0 : i32
    %4 = vector.broadcast %c0_i32 : i32 to vector<16x32xi32>
    %5 = arith.addi %3, %4 : vector<16x32xi32>
    %6 = arith.cmpi eq, %1, %5 : vector<16x32xi32>
    %7 = arith.extui %6 : vector<16x32xi1> to vector<16x32xi32>
    %8 = arith.sitofp %7 : vector<16x32xi32> to vector<16x32xf32>
    %9 = tpu.iota {dimensions = array<i32: 0>} : vector<16x32xi32>
    %10 = tpu.iota {dimensions = array<i32: 1>} : vector<16x32xi32>
    %c2_i32_0 = arith.constant 2 : i32
    %11 = vector.broadcast %c2_i32_0 : i32 to vector<16x32xi32>
    %12 = arith.muli %11, %9 : vector<16x32xi32>
    %c1_i32 = arith.constant 1 : i32
    %13 = vector.broadcast %c1_i32 : i32 to vector<16x32xi32>
    %14 = arith.addi %12, %13 : vector<16x32xi32>
    %15 = arith.cmpi eq, %10, %14 : vector<16x32xi32>
    %16 = arith.extui %15 : vector<16x32xi1> to vector<16x32xi32>
    %17 = arith.sitofp %16 : vector<16x32xi32> to vector<16x32xf32>
    %c0_i32_1 = arith.constant 0 : i32
    %c4_i32 = arith.constant 4 : i32
    %18 = arith.addi %c0_i32_1, %c4_i32 : i32
    %c1_i32_2 = arith.constant 1 : i32
    scf.for %arg4 = %c0_i32_1 to %18 step %c1_i32_2  : i32 {
      %c0 = arith.constant 0 : index
      %c0_4 = arith.constant 0 : index
      %c0_5 = arith.constant 0 : index
      %19 = arith.index_cast %arg4 : i32 to index
      %c0_6 = arith.constant 0 : index
      %c0_7 = arith.constant 0 : index
      %20 = vector.load %arg2[%c0, %c0_4, %c0_5, %19, %c0_6, %c0_7] : memref<1x2x2x4x16x16xf32, #tpu.memory_space<vmem>>, vector<1x1x1x1x16x16xf32>
      %21 = vector.shape_cast %20 : vector<1x1x1x1x16x16xf32> to vector<16x16xf32>
      %cst = arith.constant dense<0.000000e+00> : vector<16x32xf32>
      %22 = tpu.matmul %21, %8, %cst {dimension_numbers = #tpu.dot_dimension_numbers<[1], [0], [0], [1], [0, 0, 1, 1], [], []>, precision = #tpu.contract_precision<fp32>} : vector<16x16xf32>, vector<16x32xf32>, vector<16x32xf32> -> vector<16x32xf32>
      %c0_8 = arith.constant 0 : index
      %c0_9 = arith.constant 0 : index
      %c1 = arith.constant 1 : index
      %23 = arith.index_cast %arg4 : i32 to index
      %c0_10 = arith.constant 0 : index
      %c0_11 = arith.constant 0 : index
      %24 = vector.load %arg2[%c0_8, %c0_9, %c1, %23, %c0_10, %c0_11] : memref<1x2x2x4x16x16xf32, #tpu.memory_space<vmem>>, vector<1x1x1x1x16x16xf32>
      %25 = vector.shape_cast %24 : vector<1x1x1x1x16x16xf32> to vector<16x16xf32>
      %cst_12 = arith.constant dense<0.000000e+00> : vector<16x32xf32>
      %26 = tpu.matmul %25, %17, %cst_12 {dimension_numbers = #tpu.dot_dimension_numbers<[1], [0], [0], [1], [0, 0, 1, 1], [], []>, precision = #tpu.contract_precision<fp32>} : vector<16x16xf32>, vector<16x32xf32>, vector<16x32xf32> -> vector<16x32xf32>
      %27 = arith.addf %22, %26 : vector<16x32xf32>
      %c0_13 = arith.constant 0 : index
      %28 = arith.index_cast %arg4 : i32 to index
      %c0_14 = arith.constant 0 : index
      %c0_15 = arith.constant 0 : index
      %29 = vector.load %arg3[%c0_13, %28, %c0_14, %c0_15] : memref<1x4x16x64xf32, #tpu.memory_space<vmem>>, vector<1x1x16x32xf32>
      %30 = vector.shape_cast %29 : vector<1x1x16x32xf32> to vector<16x32xf32>
      %31 = vector.shape_cast %27 : vector<16x32xf32> to vector<1x1x16x32xf32>
      tpu.vector_store %arg3[%c0_13, %28, %c0_14, %c0_15], %31 {strides = array<i32>} : memref<1x4x16x64xf32, #tpu.memory_space<vmem>>, vector<1x1x16x32xf32>,
      %c0_16 = arith.constant 0 : index
      %c1_17 = arith.constant 1 : index
      %c0_18 = arith.constant 0 : index
      %32 = arith.index_cast %arg4 : i32 to index
      %c0_19 = arith.constant 0 : index
      %c0_20 = arith.constant 0 : index
      %33 = vector.load %arg2[%c0_16, %c1_17, %c0_18, %32, %c0_19, %c0_20] : memref<1x2x2x4x16x16xf32, #tpu.memory_space<vmem>>, vector<1x1x1x1x16x16xf32>
      %34 = vector.shape_cast %33 : vector<1x1x1x1x16x16xf32> to vector<16x16xf32>
      %cst_21 = arith.constant dense<0.000000e+00> : vector<16x32xf32>
      %35 = tpu.matmul %34, %8, %cst_21 {dimension_numbers = #tpu.dot_dimension_numbers<[1], [0], [0], [1], [0, 0, 1, 1], [], []>, precision = #tpu.contract_precision<fp32>} : vector<16x16xf32>, vector<16x32xf32>, vector<16x32xf32> -> vector<16x32xf32>
      %c0_22 = arith.constant 0 : index
      %c1_23 = arith.constant 1 : index
      %c1_24 = arith.constant 1 : index
      %36 = arith.index_cast %arg4 : i32 to index
      %c0_25 = arith.constant 0 : index
      %c0_26 = arith.constant 0 : index
      %37 = vector.load %arg2[%c0_22, %c1_23, %c1_24, %36, %c0_25, %c0_26] : memref<1x2x2x4x16x16xf32, #tpu.memory_space<vmem>>, vector<1x1x1x1x16x16xf32>
      %38 = vector.shape_cast %37 : vector<1x1x1x1x16x16xf32> to vector<16x16xf32>
      %cst_27 = arith.constant dense<0.000000e+00> : vector<16x32xf32>
      %39 = tpu.matmul %38, %17, %cst_27 {dimension_numbers = #tpu.dot_dimension_numbers<[1], [0], [0], [1], [0, 0, 1, 1], [], []>, precision = #tpu.contract_precision<fp32>} : vector<16x16xf32>, vector<16x32xf32>, vector<16x32xf32> -> vector<16x32xf32>
      %40 = arith.addf %35, %39 : vector<16x32xf32>
      %c0_28 = arith.constant 0 : index
      %41 = arith.index_cast %arg4 : i32 to index
      %c0_29 = arith.constant 0 : index
      %c32 = arith.constant 32 : index
      %42 = vector.load %arg3[%c0_28, %41, %c0_29, %c32] : memref<1x4x16x64xf32, #tpu.memory_space<vmem>>, vector<1x1x16x32xf32>
      %43 = vector.shape_cast %42 : vector<1x1x16x32xf32> to vector<16x32xf32>
      %44 = vector.shape_cast %40 : vector<16x32xf32> to vector<1x1x16x32xf32>
      tpu.vector_store %arg3[%c0_28, %41, %c0_29, %c32], %44 {strides = array<i32>} : memref<1x4x16x64xf32, #tpu.memory_space<vmem>>, vector<1x1x16x32xf32>,
    }
    %c4_i32_3 = arith.constant 4 : i32
    return
  }
  func.func @transform_0(%arg0: i32, %arg1: i32) -> (i32, i32, i32, i32, i32, i32) {
    %c0_i32 = arith.constant 0 : i32
    %c0_i32_0 = arith.constant 0 : i32
    %c0_i32_1 = arith.constant 0 : i32
    %c0_i32_2 = arith.constant 0 : i32
    %c0_i32_3 = arith.constant 0 : i32
    return %arg0, %c0_i32, %c0_i32_0, %arg1, %c0_i32_1, %c0_i32_2 : i32, i32, i32, i32, i32, i32
  }
  func.func @transform_1(%arg0: i32, %arg1: i32) -> (i32, i32, i32, i32) {
    %c0_i32 = arith.constant 0 : i32
    %c0_i32_0 = arith.constant 0 : i32
    %c0_i32_1 = arith.constant 0 : i32
    return %arg0, %arg1, %c0_i32, %c0_i32_0 : i32, i32, i32, i32
  }
}

</mosaic_0001>

<bundles_post_ra>
// kernel: expand_forward.1
= control target key start
LH: loop header
LB: loop body
LE: loop exit
PB: predicated region body
PF: predicated region fallthrough
CT: control target
= control target key end

     0   :  { %6 = vsyncpa [#allocation3], 0  ;;  %s3322_s0 = inlined_call_operand.hbm [shape: f32[2,2,2,4,16,16], index: 0, kind: input, shape index: {}]   ;;  %s3323_s1 = inlined_call_operand.vmem [shape: f32[2,4,16,64], index: 1, kind: output, shape index: {}]  }
   0x1   :  { %8 = vsyncpa [#allocation3 + $0x1], 0  ;;  %s2867_s6 = smov 0   ;;  %s2869_s7 = smov 0  }
   0x2   :  { %s2871_s8 = smov 0   ;;  %s2873_s9 = smov 0  }
   0x3   :  { %s2875_s10 = smov 0   ;;  %s2877_s11 = smov 0  }
   0x4 LB: > { %s2378_s12 = sadd.s32 4294967295, %s2845_s11   ;;  %s26_s13 = sadd.s32 1, %s2841_s10  ;;  %s2845_s11 = sphi %s2877_s11, %s14_s11   ;;  %s2841_s10 = sphi %s2875_s10, %s3339_s10   ;;  %s2837_s9 = sphi %s2873_s9, %s3338_s9   ;;  %s2833_s8 = sphi %s2871_s8, %s3337_s8   ;;  %s2829_s7 = sphi %s2869_s7, %s3336_s7   ;;  %s2825_s6 = sphi %s2867_s6, %s3335_s6  }
   0x5   : > { %p28_p0 = scmp.ge.s32.totalorder %s26_s13, 2  ;;  %s35_s14 = sadd.s32 1, %s2833_s8 }
   0x6   : > { %p42_p1 = scmp.ne.s32.totalorder %s2833_s8, %s2829_s7  ;;  %p43_p2 = scmp.eq.s32.totalorder %s2845_s11, 0 }
   0x7   : > { %s3341_s13 = smov (%p28_p0, %s26_s13), 0  ;;  %p48_p4 = scmp.ne.s32.totalorder %s2829_s7, %s2825_s6 }
   0x8   : > { %p2903_p3 = por %p43_p2, %p42_p1  ;;  %s30_s16 = ssub.s32 %s2841_s10, %s3341_s13 }
   0x9   : > { %p49_p5 = scmp.eq.s32.totalorder %s2378_s12, 0  ;;  %p33_p6 = scmp.eq.s32.totalorder %s30_s16, 0 }
   0xa   : > { %p2701_p8 = scmp.lt.s32.totalorder %s2845_s11, 2  ;;  %s100_s19 = sand.u32 1, %s2833_s8  }
   0xb   : > { %p2910_p7 = por %p49_p5, %p48_p4  ;;  %s2429_s20 = sshll.u32 %s2841_s10, 12 }
   0xc   : > { %s2916_s18 = scalar_select %p33_p6, %s2833_s8, %s35_s14  }
   0xd   : > { %s2382_s21 = sshll.u32 %s100_s19, 8  ;;  %s113_s24 = scalar_lea.hbm %s3322_s0, %s2429_s20 }
   0xe   : > { %s104_s25 = scalar_lea.vmem [#allocation2], %s2382_s21  ;;  %p2925_p9 = pnand %p2701_p8, %p2903_p3 }
   0xf   : > { %s114_s26 = sshll.u32 %s104_s25, 4  ;;  %s101_s28 = scalar_lea.sflag [#allocation3], %s100_s19  ;;  %s115_s26 = int_to_ptr.vmem [resolvable:$true] %s114_s26 }
  0x10   : > { %p2765_p10 = pneg %p2925_p9  ;;  %s2776_s29 = scalar_lea.vmem %s115_s26, 4096 }
  0x11   : > { %p2777_p11 = scmp.ne.s32.totalorder %s115_s26, %s2776_s29  ;;  %s2851_s30 = smov [#allocation2]  }
  0x12   : > { %s2781_s2 = sshll.u32 %s2851_s30, 4  ;;  %s2782_s2 = int_to_ptr.vmem [resolvable:$false] %s2781_s2 }
  0x13   : > { %p2779_p12 = pnand %p2777_p11, %p2765_p10  ;;  %s2783_s3 = scalar_lea.vmem %s2782_s2, 8192 }
  0x14   : > { %p2784_p0 = scmp.lt.s32.totalorder %s115_s26, %s2782_s2  ;;  %p2785_p1 = scmp.lt.s32.totalorder %s2783_s3, %s2776_s29 }
  0x15   : > { %p2780_p13 = pneg %p2779_p12 }
  0x16   : > { %p2786_p2 = por %p2785_p1, %p2784_p0 }
  0x18   : > { %p2787_p3 = pnand %p2786_p2, %p2780_p13 }
  0x1a   : > { %2790 = shalt.err (!%p2787_p3)
}
  0x1b   : > { %s2852_s4 = smov 128   ;;  %s2853_s5 = smov 8  }
  0x1c   : > { %2700 = dma.hbm_to_vmem [thread:$0]  (!%p2925_p9), %s113_s24, 4096, %s115_s26, %s101_s28, %s2852_s4, %s2852_s4, %s2853_s5  }
  0x1d   : > { %p2385_p4 = scmp.ge.s32.totalorder %s2845_s11, 1  ;;  %p122_p5 = scmp.lt.s32.totalorder %s2845_s11, 3 }
  0x1f   : > { %p123_p6 = pnand %p2385_p4, %p122_p5 }
  0x20   : > { %s128_s6 = sand.u32 (!%p123_p6), 1, %s2829_s7  }
  0x21   : > { %126 = sbr.rel (%p123_p6) target bundleno = 448 (0x1c0), region = 24  ;;  %s2936_s12 = sshll.u32 (!%p123_p6), %s128_s6, 8 }
  0x22   : > { %s129_s14 = scalar_lea.sflag (!%p123_p6), [#allocation3], %s128_s6  ;;  %s132_s15 = scalar_lea.vmem (!%p123_p6), [#allocation2], %s2936_s12 }
  0x26   : > { %2820 = dma.done.wait (%p2910_p7), %s129_s14, 4096  }
  0x27   : > { %2822 = vsyncadd (%p2910_p7), %s129_s14, 4294963200  ;;  %p158_p8 = scmp.lt.s32.totalorder %s2837_s9, 1  ;;  %v168_v0 = vlaneseq  ;;  %v2854_v8 = vmov 0.0  }
  0x29   : > { %s3343_s9 = smov (!%p158_p8, %s2837_s9), 1  ;;  %v169_v1 = vshrl.u32 %v168_v0, 7  ;;  %v172_v2 = vand.u32 127, %v168_v0 }
  0x2a   : > { %s2430_s16 = sshll.u32 %s3343_s9, 6  ;;  %s2982_s9 = smov 0  }
  0x2b   : > { %v170_v3 = vadd.s32 8, %v169_v1  ;;  %v173_v4 = vmul.u32 2, %v169_v1  ;;  %s2948_s21 = scalar_lea.vmem %s3323_s1, %s2430_s16 }
  0x2d   : > { %v174_v5 = vmul.u32 2, %v170_v3  ;;  %vm2950_vm0 = vcmp.eq.s32.totalorder %v172_v2, %v173_v4  ;;  %v181_v7 = vadd.s32 1, %v173_v4 }
  0x2e   : > { %v2956_v9 = vsel %vm2950_vm0, 1.0, %v2854_v8 }
  0x2f   : > { %vm2958_vm1 = vcmp.eq.s32.totalorder %v172_v2, %v174_v5  ;;  %v182_v11 = vadd.s32 1, %v174_v5  ;;  %vm2962_vm2 = vcmp.eq.s32.totalorder %v172_v2, %v181_v7 }
  0x30   : > { %v2968_v13 = vsel %vm2958_vm1, 1.0, %v2854_v8  ;;  %v2972_v14 = vsel %vm2962_vm2, 1.0, %v2854_v8 }
  0x31   : > { %vm2974_vm3 = vcmp.eq.s32.totalorder %v172_v2, %v182_v11 }
  0x32   : > { %v2980_v16 = vsel %vm2974_vm3, 1.0, %v2854_v8 }
  0x33 LB: >> { %v2989_v17 = vsub.f32 %v2980_v16, %v2980_v16  ;;  %v2993_v18 = vsub.f32 %v2972_v14, %v2972_v14  ;;  %v2855_v19 = vmov 1.0   ;;  %s2393_s17 = sshll.u32 %s2849_s9, 4  ;;  %vm203_vm4 = vcmask 130048   ;;  %s2856_s24 = smov 32   ;;  %s2849_s9 = sphi %s2982_s9, %s194_s9  }
  0x34   : >> { %2527 = vmatprep.subr.msk.mxu0 %vm2974_vm3, %v2855_v19  ;;  %s3015_s22 = scalar_lea.vmem %s132_s15, %s2393_s17 [#allocation2]  ;;  %v3045_v41 = vsub.f32 %v2968_v13, %v2968_v13  ;;  %v3057_v45 = vsub.f32 %v2956_v9, %v2956_v9  ;;  %s3295_s23 = scalar_lea.vmem %s2948_s21, %s2393_s17  ;;  %vm1221_vm5 = vcmask 261120   ;;  %vm2256_vm6 = vcmask 523520  }
  0x35   : >> { %2528 = vmatpush3.msk.msra.mxu0 %vm2974_vm3, %v2855_v19  ;;  %v3002_v20 = vand.u32 4294901760, %v2989_v17  ;;  %v3005_v21 = vand.u32 4294901760, %v2993_v18  ;;  %v2395_v24 = vld [vmem:[%s3015_s22 + $0x40] sm:$0xff]  ;;  %v2396_v25 = vld [vmem:[%s3015_s22 + $0x48] sm:$0xff]  ;;  %s194_s9 = sadd.s32 1, %s2849_s9  }
  0x36   : >> { %2529 = vmatprep.subr.msk.mxu0 %vm2962_vm2, %v2855_v19  ;;  %v197_v26 = vld [vmem:[%s3015_s22] sm:$0xff]  ;;  %v205_v27 = vsel %vm203_vm4, %v2395_v24, 0  ;;  %v208_v28 = vsel %vm203_vm4, %v2396_v25, 0  ;;  %v198_v29 = vld [vmem:[%s3015_s22 + $0x8] sm:$0xff]  ;;  %v3069_v49 = vand.u32 4294901760, %v3045_v41  ;;  %v3078_v51 = vand.u32 4294901760, %v3057_v45 }
  0x37   : >> { %v329_v22 = vsub.f32 %v2989_v17, %v3002_v20  ;;  %2530 = vmatpush3.msk.msra.mxu0 %vm2962_vm2, %v2855_v19  ;;  %v336_v23 = vsub.f32 %v2993_v18, %v3005_v21  ;;  %v277_v32 = vand.u32 4294901760, %v205_v27  ;;  %v287_v33 = vand.u32 4294901760, %v208_v28  ;;  %v2413_v57 = vld [vmem:[%s3015_s22 + $0xc0] sm:$0xff]  ;;  %v2414_v60 = vld [vmem:[%s3015_s22 + $0xc8] sm:$0xff]  ;;  %p191_p7 = scmp.ge.s32.totalorder %s194_s9, 4  }
  0x38   : >> { %2541 = vmatprep.subr.mxu0 %v2989_v17  ;;  %v713_v34 = vsel %vm203_vm4, %v197_v26, 0  ;;  %v716_v37 = vsel %vm203_vm4, %v198_v29, 0  ;;  %v837_v53 = vsub.f32 %v3045_v41, %v3069_v49  ;;  %v844_v55 = vsub.f32 %v3057_v45, %v3078_v51  ;;  %v2411_v24 = vld [vmem:[%s3015_s22 + $0x88] sm:$0xff] }
  0x39   : >> { %v3031_v30 = vand.u32 4294901760, %v329_v22  ;;  %v3033_v31 = vand.u32 4294901760, %v336_v23  ;;  %v278_v35 = vsub.f32 %v205_v27, %v277_v32  ;;  %2538 = vmatprep.mubr.f32.mxu1 %v277_v32  ;;  %v288_v36 = vsub.f32 %v208_v28, %v287_v33  ;;  %v2410_v22 = vld [vmem:[%s3015_s22 + $0x80] sm:$0xff] }
  0x3a   : >> { %v3039_v38 = vand.u32 4294901760, %v713_v34  ;;  %v3047_v42 = vand.u32 4294901760, %v716_v37  ;;  %v3103_v58 = vand.u32 4294901760, %v837_v53  ;;  %v1233_v61 = vsel %vm203_vm4, %v2413_v57, 0 }
  0x3b   : >> { %2534 = vmatprep.subr.mxu1 %v3031_v30  ;;  %v279_v39 = vand.u32 4294901760, %v278_v35  ;;  %v289_v40 = vand.u32 4294901760, %v288_v36  ;;  %v3112_v62 = vand.u32 4294901760, %v844_v55  ;;  %v1236_v0 = vsel %vm203_vm4, %v2414_v60, 0 }
  0x3c   : >> { %2535 = vmatpush3.msra.mxu1 %v3031_v30  ;;  %v3060_v46 = vsub.f32 %v713_v34, %v3039_v38  ;;  %v3072_v50 = vsub.f32 %v716_v37, %v3047_v42  ;;  %v3122_v2 = vand.u32 4294901760, %v1233_v61  ;;  %v3129_v3 = vand.u32 4294901760, %v1236_v0 }
  0x3d   : >> { %2536 = vmatprep.subr.mxu1 %v3033_v31  ;;  %v280_v43 = vsub.f32 %v278_v35, %v279_v39  ;;  %v290_v44 = vsub.f32 %v288_v36, %v289_v40  ;;  %v1741_v25 = vsel %vm203_vm4, %v2410_v22, 0  ;;  %v1744_v27 = vsel %vm203_vm4, %v2411_v24, 0 }
  0x3e   : >> { %2537 = vmatpush3.msra.mxu1 %v3033_v31  ;;  %v787_v52 = vand.u32 4294901760, %v3060_v46  ;;  %v797_v54 = vand.u32 4294901760, %v3072_v50  ;;  %v1306_v4 = vsub.f32 %v1233_v61, %v3122_v2  ;;  %v1316_v5 = vsub.f32 %v1236_v0, %v3129_v3 }
  0x3f   : >> { %2539 = vmatmul.mubr.f32.vlgmr.msra.gmra.mxu1 %v287_v33  ;;  %2548 = vmatprep.subr.msk.mxu1 %vm2974_vm3, %v2855_v19  ;;  %v281_v47 = vand.u32 4294901760, %v280_v43  ;;  %v291_v48 = vand.u32 4294901760, %v290_v44  ;;  %v3188_v29 = vand.u32 4294901760, %v1741_v25 }
  0x40   : >> { %2549 = vmatpush3.msk.msra.mxu1 %vm2974_vm3, %v2855_v19  ;;  %2552 = vmatprep.mubr.f32.mxu1 %v279_v39  ;;  %v788_v56 = vsub.f32 %v3060_v46, %v787_v52  ;;  %v798_v59 = vsub.f32 %v3072_v50, %v797_v54  ;;  %v1307_v7 = vand.u32 4294901760, %v1306_v4  ;;  %v1317_v8 = vand.u32 4294901760, %v1316_v5 }
  0x41   : >> { %2550 = vmatprep.subr.msk.mxu1 %vm2962_vm2, %v2855_v19  ;;  %2531 = vmatprep.mubr.f32.mxu0 %v281_v47 }
  0x42   : >> { %2551 = vmatpush3.msk.msra.mxu1 %vm2962_vm2, %v2855_v19  ;;  %2532 = vmatmul.mubr.f32.vlgmr.msra.gmra.mxu0 %v291_v48  ;;  %v789_v63 = vand.u32 4294901760, %v788_v56  ;;  %v799_v1 = vand.u32 4294901760, %v798_v59  ;;  %v1308_v11 = vsub.f32 %v1306_v4, %v1307_v7  ;;  %v1318_v23 = vsub.f32 %v1316_v5, %v1317_v8 }
  0x43   : >> { %2553 = vmatmul.mubr.f32.vlgmr.msra.gmra.mxu1 %v289_v40  ;;  %2562 = vmatprep.subr.msk.mxu1 %vm2974_vm3, %v2855_v19 }
  0x44   : >> { %2542 = vmatpush3.msra.mxu0 %v2989_v17  ;;  %2545 = vmatprep.mubr.f32.mxu0 %v278_v35  ;;  %v1309_v26 = vand.u32 4294901760, %v1308_v11  ;;  %v1319_v28 = vand.u32 4294901760, %v1318_v23 }
  0x45   : >> { %2543 = vmatprep.subr.mxu0 %v2993_v18  ;;  %2563 = vmatpush3.msk.msra.mxu1 %vm2974_vm3, %v2855_v19 }
  0x46   : >> { %2544 = vmatpush3.msra.mxu0 %v2993_v18  ;;  %2564 = vmatprep.subr.msk.mxu1 %vm2962_vm2, %v2855_v19 }
  0x47   : >> { %2555 = vmatprep.subr.mxu0 %v3002_v20  ;;  %2546 = vmatmul.mubr.f32.vlgmr.msra.gmra.mxu0 %v288_v36 }
  0x48   : >> { %2556 = vmatpush3.msra.mxu0 %v3002_v20  ;;  %2559 = vmatprep.mubr.f32.mxu0 %v277_v32 }
  0x49   : >> { %2557 = vmatprep.subr.mxu0 %v3005_v21  ;;  %2565 = vmatpush3.msk.msra.mxu1 %vm2962_vm2, %v2855_v19 }
  0x4a   : >> { %2558 = vmatpush3.msra.mxu0 %v3005_v21  ;;  %2566 = vmatprep.mubr.f32.mxu1 %v277_v32  ;;  %v3195_v32 = vand.u32 4294901760, %v1744_v27 }
  0x4b   : >> { %2569 = vmatprep.subr.msk.mxu0 %vm2958_vm1, %v2855_v19  ;;  %2560 = vmatmul.mubr.f32.vlgmr.msra.gmra.mxu0 %v287_v33 }
  0x4c   : >> { %2567 = vmatmul.mubr.f32.vlgmr.msra.gmra.mxu1 %v287_v33  ;;  %2570 = vmatpush3.msk.msra.mxu0 %vm2958_vm1, %v2855_v19  ;;  %v1814_v33 = vsub.f32 %v1741_v25, %v3188_v29 }
  0x4d   : >> { %2576 = vmatprep.subr.mxu1 %v3103_v58  ;;  %2571 = vmatprep.subr.msk.mxu0 %vm2950_vm0, %v2855_v19 }
  0x4e   : >> { %2577 = vmatpush3.msra.mxu1 %v3103_v58  ;;  %2572 = vmatpush3.msk.msra.mxu0 %vm2950_vm0, %v2855_v19 }
  0x4f   : >> { %2578 = vmatprep.subr.mxu1 %v3112_v62  ;;  %2573 = vmatprep.mubr.f32.mxu0 %v789_v63 }
  0x50   : >> { %2579 = vmatpush3.msra.mxu1 %v3112_v62  ;;  %2580 = vmatprep.mubr.f32.mxu1 %v3039_v38 }
  0x51   : >> { %2583 = vmatprep.subr.mxu0 %v3045_v41  ;;  %2574 = vmatmul.mubr.f32.vlgmr.msra.gmra.mxu0 %v799_v1 }
  0x52   : >> { %2581 = vmatmul.mubr.f32.vlgmr.msra.gmra.mxu1 %v3047_v42  ;;  %2584 = vmatpush3.msra.mxu0 %v3045_v41 }
  0x53   : >> { %2590 = vmatprep.subr.msk.mxu1 %vm2958_vm1, %v2855_v19  ;;  %2585 = vmatprep.subr.mxu0 %v3057_v45 }
  0x54   : >> { %2591 = vmatpush3.msk.msra.mxu1 %vm2958_vm1, %v2855_v19  ;;  %2586 = vmatpush3.msra.mxu0 %v3057_v45 }
  0x55   : >> { %2592 = vmatprep.subr.msk.mxu1 %vm2950_vm0, %v2855_v19  ;;  %2587 = vmatprep.mubr.f32.mxu0 %v3060_v46 }
  0x56   : >> { %2593 = vmatpush3.msk.msra.mxu1 %vm2950_vm0, %v2855_v19  ;;  %2594 = vmatprep.mubr.f32.mxu1 %v787_v52 }
  0x57   : >> { %2597 = vmatprep.subr.mxu0 %v3069_v49  ;;  %2588 = vmatmul.mubr.f32.vlgmr.msra.gmra.mxu0 %v3072_v50 }
  0x58   : >> { %2595 = vmatmul.mubr.f32.vlgmr.msra.gmra.mxu1 %v797_v54  ;;  %2598 = vmatpush3.msra.mxu0 %v3069_v49 }
  0x59   : >> { %2604 = vmatprep.subr.msk.mxu1 %vm2958_vm1, %v2855_v19  ;;  %2599 = vmatprep.subr.mxu0 %v3078_v51 }
  0x5a   : >> { %2605 = vmatpush3.msk.msra.mxu1 %vm2958_vm1, %v2855_v19  ;;  %2600 = vmatpush3.msra.mxu0 %v3078_v51 }
  0x5b   : >> { %2606 = vmatprep.subr.msk.mxu1 %vm2950_vm0, %v2855_v19  ;;  %2601 = vmatprep.mubr.f32.mxu0 %v3039_v38 }
  0x5c   : >> { %2607 = vmatpush3.msk.msra.mxu1 %vm2950_vm0, %v2855_v19  ;;  %2608 = vmatprep.mubr.f32.mxu1 %v3039_v38 }
  0x5d   : >> { %2611 = vmatprep.subr.msk.mxu0 %vm2974_vm3, %v2855_v19  ;;  %2602 = vmatmul.mubr.f32.vlgmr.msra.gmra.mxu0 %v3047_v42 }
  0x5e   : >> { %2609 = vmatmul.mubr.f32.vlgmr.msra.gmra.mxu1 %v3047_v42  ;;  %2612 = vmatpush3.msk.msra.mxu0 %vm2974_vm3, %v2855_v19 }
  0x5f   : >> { %2618 = vmatprep.subr.mxu1 %v3031_v30  ;;  %2613 = vmatprep.subr.msk.mxu0 %vm2962_vm2, %v2855_v19 }
  0x60   : >> { %2619 = vmatpush3.msra.mxu1 %v3031_v30  ;;  %2614 = vmatpush3.msk.msra.mxu0 %vm2962_vm2, %v2855_v19  ;;  %v1824_v30 = vsub.f32 %v1744_v27, %v3195_v32 }
  0x61   : >> { %2620 = vmatprep.subr.mxu1 %v3033_v31  ;;  %2615 = vmatprep.mubr.f32.mxu0 %v1309_v26 }
  0x62   : >> { %2621 = vmatpush3.msra.mxu1 %v3033_v31  ;;  %2622 = vmatprep.mubr.f32.mxu1 %v3122_v2  ;;  %v1825_v31 = vand.u32 4294901760, %v1824_v30 }
  0x63   : >> { %2625 = vmatprep.subr.mxu0 %v2989_v17  ;;  %2616 = vmatmul.mubr.f32.vlgmr.msra.gmra.mxu0 %v1319_v28 }
  0x64   : >> { %2623 = vmatmul.mubr.f32.vlgmr.msra.gmra.mxu1 %v3129_v3  ;;  %2626 = vmatpush3.msra.mxu0 %v2989_v17  ;;  %v1815_v17 = vand.u32 4294901760, %v1814_v33 }
  0x65   : >> { %2632 = vmatprep.subr.msk.mxu1 %vm2974_vm3, %v2855_v19  ;;  %2627 = vmatprep.subr.mxu0 %v2993_v18 }
  0x66   : >> { %2633 = vmatpush3.msk.msra.mxu1 %vm2974_vm3, %v2855_v19  ;;  %2628 = vmatpush3.msra.mxu0 %v2993_v18  ;;  %v1816_v18 = vsub.f32 %v1814_v33, %v1815_v17 }
  0x67   : >> { %2634 = vmatprep.subr.msk.mxu1 %vm2962_vm2, %v2855_v19  ;;  %2629 = vmatprep.mubr.f32.mxu0 %v1306_v4 }
  0x68   : >> { %2635 = vmatpush3.msk.msra.mxu1 %vm2962_vm2, %v2855_v19  ;;  %2636 = vmatprep.mubr.f32.mxu1 %v1307_v7 }
  0x69   : >> { %2639 = vmatprep.subr.mxu0 %v3002_v20  ;;  %2630 = vmatmul.mubr.f32.vlgmr.msra.gmra.mxu0 %v1316_v5 }
  0x6a   : >> { %2637 = vmatmul.mubr.f32.vlgmr.msra.gmra.mxu1 %v1317_v8  ;;  %2640 = vmatpush3.msra.mxu0 %v3002_v20  ;;  %v1826_v20 = vsub.f32 %v1824_v30, %v1825_v31 }
  0x6b   : >> { %2646 = vmatprep.subr.msk.mxu1 %vm2974_vm3, %v2855_v19  ;;  %2641 = vmatprep.subr.mxu0 %v3005_v21 }
  0x6c   : >> { %2647 = vmatpush3.msk.msra.mxu1 %vm2974_vm3, %v2855_v19  ;;  %2642 = vmatpush3.msra.mxu0 %v3005_v21  ;;  %v1817_v21 = vand.u32 4294901760, %v1816_v18  ;;  %v1827_v34 = vand.u32 4294901760, %v1826_v20 }
  0x6d   : >> { %2648 = vmatprep.subr.msk.mxu1 %vm2962_vm2, %v2855_v19  ;;  %2643 = vmatprep.mubr.f32.mxu0 %v3122_v2 }
  0x6e   : >> { %2649 = vmatpush3.msk.msra.mxu1 %vm2962_vm2, %v2855_v19  ;;  %2650 = vmatprep.mubr.f32.mxu1 %v3122_v2 }
  0x6f   : >> { %2653 = vmatprep.subr.msk.mxu0 %vm2958_vm1, %v2855_v19  ;;  %2644 = vmatmul.mubr.f32.vlgmr.msra.gmra.mxu0 %v3129_v3 }
  0x70   : >> { %2651 = vmatmul.mubr.f32.vlgmr.msra.gmra.mxu1 %v3129_v3  ;;  %2654 = vmatpush3.msk.msra.mxu0 %vm2958_vm1, %v2855_v19 }
  0x71   : >> { %2660 = vmatprep.subr.mxu1 %v3103_v58  ;;  %2655 = vmatprep.subr.msk.mxu0 %vm2950_vm0, %v2855_v19 }
  0x72   : >> { %2661 = vmatpush3.msra.mxu1 %v3103_v58  ;;  %2656 = vmatpush3.msk.msra.mxu0 %vm2950_vm0, %v2855_v19 }
  0x73   : >> { %2662 = vmatprep.subr.mxu1 %v3112_v62  ;;  %2657 = vmatprep.mubr.f32.mxu0 %v1817_v21 }
  0x74   : >> { %2663 = vmatpush3.msra.mxu1 %v3112_v62  ;;  %2664 = vmatprep.mubr.f32.mxu1 %v3188_v29 }
  0x75   : >> { %2667 = vmatprep.subr.mxu0 %v3045_v41  ;;  %2658 = vmatmul.mubr.f32.vlgmr.msra.gmra.mxu0 %v1827_v34 }
  0x76   : >> { %2665 = vmatmul.mubr.f32.vlgmr.msra.gmra.mxu1 %v3195_v32  ;;  %2668 = vmatpush3.msra.mxu0 %v3045_v41 }
  0x77   : >> { %2674 = vmatprep.subr.msk.mxu1 %vm2958_vm1, %v2855_v19  ;;  %2669 = vmatprep.subr.mxu0 %v3057_v45 }
  0x78   : >> { %2675 = vmatpush3.msk.msra.mxu1 %vm2958_vm1, %v2855_v19  ;;  %2670 = vmatpush3.msra.mxu0 %v3057_v45 }
  0x79   : >> { %2676 = vmatprep.subr.msk.mxu1 %vm2950_vm0, %v2855_v19  ;;  %2671 = vmatprep.mubr.f32.mxu0 %v1814_v33 }
  0x7a   : >> { %2677 = vmatpush3.msk.msra.mxu1 %vm2950_vm0, %v2855_v19  ;;  %2678 = vmatprep.mubr.f32.mxu1 %v1815_v17 }
  0x7b   : >> { %2681 = vmatprep.subr.mxu0 %v3069_v49  ;;  %2672 = vmatmul.mubr.f32.vlgmr.msra.gmra.mxu0 %v1824_v30 }
  0x7c   : >> { %2679 = vmatmul.mubr.f32.vlgmr.msra.gmra.mxu1 %v1825_v31  ;;  %2682 = vmatpush3.msra.mxu0 %v3069_v49 }
  0x7d   : >> { %2688 = vmatprep.subr.msk.mxu1 %vm2958_vm1, %v2855_v19  ;;  %2683 = vmatprep.subr.mxu0 %v3078_v51 }
  0x7e   : >> { %2689 = vmatpush3.msk.msra.mxu1 %vm2958_vm1, %v2855_v19  ;;  %2684 = vmatpush3.msra.mxu0 %v3078_v51 }
  0x7f   : >> { %2690 = vmatprep.subr.msk.mxu1 %vm2950_vm0, %v2855_v19  ;;  %2685 = vmatprep.mubr.f32.mxu0 %v3188_v29 }
  0x80   : >> { %2691 = vmatpush3.msk.msra.mxu1 %vm2950_vm0, %v2855_v19  ;;  %2692 = vmatprep.mubr.f32.mxu1 %v3188_v29 }
  0x81   : >> { %2686 = vmatmul.mubr.f32.vlgmr.msra.gmra.mxu0 %v3195_v32  ;;  %2693 = vmatmul.mubr.f32.vlgmr.msra.gmra.mxu1 %v3195_v32 }
  0xff   : >> { %v2540_v35 = vpop.f32.mrf.mxu1 }
 0x101   : >> { %v374_v36 = vpop.f32.mrf.mxu1 }
 0x102   : >> { %v2533_v37 = vpop.f32.mrf.mxu0 }
 0x103   : >> { %v2554_v38 = vpop.f32.mrf.mxu1  ;;  %v381_v40 = vadd.f32 %v2540_v35, %v2533_v37 }
 0x104   : >> { %v283_v39 = vpop.f32.mrf.mxu0 }
 0x105   : >> { %v375_v42 = vadd.f32 %v374_v36, %v283_v39  ;;  %v538_v44 = vpop.f32.mrf.mxu1 }
 0x107   : >> { %v2547_v41 = vpop.f32.mrf.mxu0 }
 0x108   : >> { %v464_v43 = vadd.f32 %v2547_v41, %v381_v40 }
 0x109   : >> { %v456_v45 = vpop.f32.mrf.mxu0 }
 0x10a   : >> { %v547_v46 = vadd.f32 %v2554_v38, %v464_v43  ;;  %v457_v47 = vadd.f32 %v456_v45, %v375_v42 }
 0x10b   : >> { %v2561_v19 = vpop.f32.mrf.mxu0 }
 0x10c   : >> { %v539_v48 = vadd.f32 %v538_v44, %v457_v47  ;;  %v630_v49 = vadd.f32 %v2561_v19, %v547_v46  ;;  %v2568_v50 = vpop.f32.mrf.mxu1 }
 0x10d   : >> { %v623_v51 = vpop.f32.mrf.mxu0 }
 0x10e   : >> { %v709_v52 = vadd.f32 %v2568_v50, %v630_v49  ;;  %v624_v53 = vadd.f32 %v623_v51, %v539_v48  ;;  %v702_v54 = vpop.f32.mrf.mxu1 }
 0x110   : >> { %v703_v55 = vadd.f32 %v702_v54, %v624_v53 }
 0x111   : >> { %v2575_v56 = vpop.f32.mrf.mxu0 }
 0x112   : >> { %v802_v57 = vadd.f32 %v2575_v56, %v709_v52  ;;  %v2582_v58 = vpop.f32.mrf.mxu1 }
 0x113   : >> { %v791_v59 = vpop.f32.mrf.mxu0 }
 0x114   : >> { %v889_v60 = vadd.f32 %v2582_v58, %v802_v57  ;;  %v792_v61 = vadd.f32 %v791_v59, %v703_v55  ;;  %v882_v62 = vpop.f32.mrf.mxu1 }
 0x116   : >> { %v883_v63 = vadd.f32 %v882_v62, %v792_v61 }
 0x117   : >> { %v2589_v0 = vpop.f32.mrf.mxu0 }
 0x118   : >> { %v972_v1 = vadd.f32 %v2589_v0, %v889_v60  ;;  %v2596_v2 = vpop.f32.mrf.mxu1 }
 0x119   : >> { %v964_v3 = vpop.f32.mrf.mxu0 }
 0x11a   : >> { %v1055_v4 = vadd.f32 %v2596_v2, %v972_v1  ;;  %v965_v5 = vadd.f32 %v964_v3, %v883_v63  ;;  %v1046_v7 = vpop.f32.mrf.mxu1 }
 0x11c   : >> { %v1047_v8 = vadd.f32 %v1046_v7, %v965_v5 }
 0x11d   : >> { %v2603_v11 = vpop.f32.mrf.mxu0 }
 0x11e   : >> { %v1138_v22 = vadd.f32 %v2603_v11, %v1055_v4  ;;  %v2610_v23 = vpop.f32.mrf.mxu1 }
 0x11f   : >> { %v1131_v24 = vpop.f32.mrf.mxu0 }
 0x120   : >> { %v1217_v25 = vadd.f32 %v2610_v23, %v1138_v22  ;;  %v1132_v26 = vadd.f32 %v1131_v24, %v1047_v8  ;;  %v1210_v27 = vpop.f32.mrf.mxu1 }
 0x122   : >> { %1223 = vst.msk [vmem:[%s3295_s23 + $0x8] sm:$0xff] %vm1221_vm5, %v1217_v25  ;;  %v1211_v28 = vadd.f32 %v1210_v27, %v1132_v26 }
 0x123   : >> { %v2617_v29 = vpop.f32.mrf.mxu0 }
 0x124   : >> { %1222 = vst.msk [vmem:[%s3295_s23] sm:$0xff] %vm1221_vm5, %v1211_v28  ;;  %v2624_v32 = vpop.f32.mrf.mxu1 }
 0x125   : >> { %v1311_v33 = vpop.f32.mrf.mxu0  ;;  %v1409_v17 = vadd.f32 %v2624_v32, %v2617_v29 }
 0x126   : >> { %v1402_v30 = vpop.f32.mrf.mxu1 }
 0x127   : >> { %v1403_v18 = vadd.f32 %v1402_v30, %v1311_v33 }
 0x129   : >> { %v2631_v31 = vpop.f32.mrf.mxu0 }
 0x12a   : >> { %v1492_v20 = vadd.f32 %v2631_v31, %v1409_v17  ;;  %v2638_v21 = vpop.f32.mrf.mxu1 }
 0x12b   : >> { %v1484_v34 = vpop.f32.mrf.mxu0 }
 0x12c   : >> { %v1575_v35 = vadd.f32 %v2638_v21, %v1492_v20  ;;  %v1485_v36 = vadd.f32 %v1484_v34, %v1403_v18  ;;  %v1566_v37 = vpop.f32.mrf.mxu1 }
 0x12e   : >> { %v1567_v38 = vadd.f32 %v1566_v37, %v1485_v36 }
 0x12f   : >> { %v2645_v39 = vpop.f32.mrf.mxu0 }
 0x130   : >> { %v1658_v40 = vadd.f32 %v2645_v39, %v1575_v35  ;;  %v2652_v41 = vpop.f32.mrf.mxu1 }
 0x131   : >> { %v1651_v42 = vpop.f32.mrf.mxu0 }
 0x132   : >> { %v1737_v43 = vadd.f32 %v2652_v41, %v1658_v40  ;;  %v1652_v44 = vadd.f32 %v1651_v42, %v1567_v38  ;;  %v1730_v45 = vpop.f32.mrf.mxu1 }
 0x134   : >> { %v1731_v46 = vadd.f32 %v1730_v45, %v1652_v44 }
 0x135   : >> { %v2659_v47 = vpop.f32.mrf.mxu0 }
 0x136   : >> { %v1830_v19 = vadd.f32 %v2659_v47, %v1737_v43  ;;  %v2666_v48 = vpop.f32.mrf.mxu1 }
 0x137   : >> { %v1819_v49 = vpop.f32.mrf.mxu0 }
 0x138   : >> { %v1820_v50 = vadd.f32 %v1819_v49, %v1731_v46  ;;  %v1910_v51 = vpop.f32.mrf.mxu1  ;;  %v1917_v52 = vadd.f32 %v2666_v48, %v1830_v19 }
 0x13a   : >> { %v1911_v53 = vadd.f32 %v1910_v51, %v1820_v50 }
 0x13b   : >> { %v2673_v54 = vpop.f32.mrf.mxu0 }
 0x13c   : >> { %v2680_v55 = vpop.f32.mrf.mxu1  ;;  %v2000_v57 = vadd.f32 %v2673_v54, %v1917_v52 }
 0x13d   : >> { %v1992_v56 = vpop.f32.mrf.mxu0 }
 0x13e   : >> { %v1993_v58 = vadd.f32 %v1992_v56, %v1911_v53  ;;  %v2074_v59 = vpop.f32.mrf.mxu1  ;;  %v2083_v63 = vadd.f32 %v2680_v55, %v2000_v57 }
 0x140   : >> { %v2075_v60 = vadd.f32 %v2074_v59, %v1993_v58 }
 0x141   : >> { %v2687_v61 = vpop.f32.mrf.mxu0  ;;  %v2694_v62 = vpop.f32.mrf.mxu1 }
 0x142   : >> { %v2166_v3 = vadd.f32 %v2687_v61, %v2083_v63 }
 0x143   : >> { %v2159_v0 = vpop.f32.mrf.mxu0  ;;  %v2238_v2 = vpop.f32.mrf.mxu1 }
 0x144   : >> { %v2160_v1 = vadd.f32 %v2159_v0, %v2075_v60  ;;  %v2245_v5 = vadd.f32 %v2694_v62, %v2166_v3 }
 0x146   : >> { %v2239_v4 = vadd.f32 %v2238_v2, %v2160_v1 }
 0x148   : >> { %2250 = vrot.lane.b32.xlu0 %v2239_v4, %s2856_s24 }
 0x14c   : >> { %2252 = vrot.lane.b32.xlu0 %v2245_v5, %s2856_s24 }
 0x1ba   : >> { %v2251_v7 = vpop.permute.xlu0 %2250 }
 0x1bb   : >> { %2257 = vst.msk [vmem:[%s3295_s23] sm:$0xff] %vm2256_vm6, %v2251_v7  ;;  %193 = sbr.rel (!%p191_p7) target bundleno = 51 (0x33), region = 76 }
 0x1be   : >> { %v2253_v8 = vpop.permute.xlu0 %2252 }
 0x1bf   : >> { %2258 = vst.msk [vmem:[%s3295_s23 + $0x8] sm:$0xff] %vm2256_vm6, %v2253_v8 }
 0x1c0 PF: > { %s14_s11 = sadd.s32 1, %s2845_s11   ;;  %s3335_s6 = smov %s2829_s7 }
 0x1c1   : > { %p11_p9 = scmp.ge.s32.totalorder %s14_s11, 4   ;;  %s3336_s7 = smov %s2833_s8 }
 0x1c2   : > { %s3337_s8 = smov %s2916_s18  ;;  %s3338_s9 = smov %s2841_s10 }
 0x1c3   : > { %s3339_s10 = smov %s3341_s13  ;;  %13 = sbr.rel (!%p11_p9) target bundleno = 4 (0x4), region = 87 }
 0x1c8   :  { %2291 = vsyncpa [#allocation3], 1 }
 0x1c9   :  { %2293 = vsyncpa [#allocation3 + $0x1], 1 }

</bundles_post_ra>
